<compile_context>
chip_gen: v7x
topology: tpu7x:2x2x1
jax: 0.10.0
libtpu: 0.0.40
codegen_flags: <defaults>
</compile_context>

<pallas_src>
import jax
import jax.numpy as jnp
from jax.experimental import pallas as pl
from jax.experimental.pallas import tpu as pltpu

LENGTH = 64
D_IN = 1 * LENGTH     # 64
D_H = 4 * LENGTH      # 256
D_OUT = 2 * LENGTH    # 128

_MIN_ROWS_PER_STEP = 128  # don't split tiny batches across grid steps


def _round_up(x, m):
    return (x + m - 1) // m * m


def _mlp_kernel(x_ref, w1_ref, w2_ref, w3_ref, o_ref):
    # Fused 3-layer MLP: all weights (~230 KiB in bf16) and one batch tile fit
    # comfortably in VMEM.  bf16 MXU operands, f32 accumulation; ai8x clamp to
    # [-1, 1] after each layer.  The cast of x is cheap VPU work hidden under
    # the matmuls.
    x = x_ref[...].astype(jnp.bfloat16)

    h = jnp.dot(x, w1_ref[...], preferred_element_type=jnp.float32)
    h = jnp.clip(h, -1.0, 1.0).astype(jnp.bfloat16)

    h = jnp.dot(h, w2_ref[...], preferred_element_type=jnp.float32)
    h = jnp.clip(h, -1.0, 1.0).astype(jnp.bfloat16)

    h = jnp.dot(h, w3_ref[...], preferred_element_type=jnp.float32)
    h = jnp.clip(h, -1.0, 1.0)

    o_ref[...] = h.astype(o_ref.dtype)


def _choose_tiling(batch, tile_max):
    """Balanced batch tiling.

    Keeps padding waste < 16 rows per step, and (for big batches) forces an
    even number of >= 2 grid steps so the 'parallel' batch axis shards evenly
    across both TensorCores on v7x.
    """
    tile_max = max(16, (int(tile_max) // 16) * 16)
    n_steps = -(-batch // tile_max)                 # ceil
    if batch >= 2 * _MIN_ROWS_PER_STEP:
        n_steps = max(n_steps, 2)
        if n_steps % 2:
            n_steps += 1                            # even -> balanced megacore
    tile_b = _round_up(-(-batch // n_steps), 16)    # multiple of 16 (bf16 packing)
    return tile_b, n_steps * tile_b


def ai85net_fft_forward(x, w1, w2, w3, *, tile_b=1024, out_dtype=jnp.float32):
    """Forward pass of AI85Net_FFT.

    x  : (B, 64)  float32
    w1 : (64, 256), w2 : (256, 256), w3 : (256, 128)  float32
         (already transposed to (in_features, out_features))
    Returns (B, 128) in out_dtype (float32 by default; pass jnp.bfloat16 if the
    consumer accepts it -- values are already clamped to [-1, 1] and computed
    from bf16 operands, and it halves the HBM writeback).
    """
    B, d_in = x.shape
    assert d_in == D_IN

    # Weights: bf16 MXU operands, resident in VMEM for the whole grid.
    w1b = w1.astype(jnp.bfloat16)
    w2b = w2.astype(jnp.bfloat16)
    w3b = w3.astype(jnp.bfloat16)

    tile_b, b_padded = _choose_tiling(B, tile_b)
    xp = x if b_padded == B else jnp.pad(x, ((0, b_padded - B), (0, 0)))
    grid = (b_padded // tile_b,)

    out_bytes = jnp.dtype(out_dtype).itemsize
    cost = pl.CostEstimate(
        flops=2 * b_padded * (D_IN * D_H + D_H * D_H + D_H * D_OUT),
        transcendentals=0,
        bytes_accessed=(
            b_padded * D_IN * 4                       # x (f32 in)
            + (w1b.size + w2b.size + w3b.size) * 2    # bf16 weights
            + b_padded * D_OUT * out_bytes            # output
        ),
    )

    out = pl.pallas_call(
        _mlp_kernel,
        out_shape=jax.ShapeDtypeStruct((b_padded, D_OUT), out_dtype),
        grid_spec=pltpu.PrefetchScalarGridSpec(
            num_scalar_prefetch=0,
            grid=grid,
            in_specs=[
                # x tile: (tile_b, 64) -- 64 equals the full feature dim, legal.
                pl.BlockSpec((tile_b, D_IN), lambda i: (i, 0)),
                # Weights: constant index_map -> resident; single-buffered
                # (second pipeline buffer would be dead VMEM).
                pl.BlockSpec((D_IN, D_H), lambda i: (0, 0),
                             pipeline_mode=pl.Buffered(1)),
                pl.BlockSpec((D_H, D_H), lambda i: (0, 0),
                             pipeline_mode=pl.Buffered(1)),
                pl.BlockSpec((D_H, D_OUT), lambda i: (0, 0),
                             pipeline_mode=pl.Buffered(1)),
            ],
            out_specs=pl.BlockSpec((tile_b, D_OUT), lambda i: (i, 0)),
        ),
        compiler_params=pltpu.CompilerParams(
            dimension_semantics=("parallel",),   # batch axis -> megacore on v7x
        ),
        cost_estimate=cost,
    )(xp, w1b, w2b, w3b)

    return out if b_padded == B else out[:B]


def init_params(key):
    """Deterministic init mimicking PyTorch Linear's U(-1/sqrt(fan_in), +1/sqrt(fan_in)).

    Returned weights are already transposed to (in_features, out_features).
    """
    k1, k2, k3 = jax.random.split(key, 3)

    def uniform_w(k, fan_in, fan_out):
        bound = 1.0 / jnp.sqrt(jnp.float32(fan_in))
        return jax.random.uniform(k, (fan_in, fan_out), jnp.float32, -bound, bound)

    w1 = uniform_w(k1, D_IN, D_H)    # linear1: 64 -> 256
    w2 = uniform_w(k2, D_H, D_H)     # linear2: 256 -> 256
    w3 = uniform_w(k3, D_H, D_OUT)   # linear3: 256 -> 128
    return w1, w2, w3


def reference_forward_f32(x, w1, w2, w3):
    h = jnp.clip(x @ w1, -1.0, 1.0)
    h = jnp.clip(h @ w2, -1.0, 1.0)
    h = jnp.clip(h @ w3, -1.0, 1.0)
    return h


def reference_forward_bf16(x, w1, w2, w3):
    # Mirrors the kernel's bf16-operand / f32-accumulate arithmetic exactly.
    def dot(a, b):
        return jnp.dot(a.astype(jnp.bfloat16), b.astype(jnp.bfloat16),
                       preferred_element_type=jnp.float32)
    h = jnp.clip(dot(x, w1), -1.0, 1.0)
    h = jnp.clip(dot(h.astype(jnp.bfloat16), w2), -1.0, 1.0)
    h = jnp.clip(dot(h.astype(jnp.bfloat16), w3), -1.0, 1.0)
    return h


if __name__ == "__main__":
    key = jax.random.PRNGKey(0)
    kx, kp = jax.random.split(key)
    w1, w2, w3 = init_params(kp)

    def check(B):
        xB = jax.random.normal(jax.random.fold_in(kx, B), (B, D_IN), jnp.float32)
        out = jax.block_until_ready(ai85net_fft_forward(xB, w1, w2, w3))
        assert out.shape == (B, D_OUT), out.shape
        # Tight check vs. a reference using the same bf16/f32 arithmetic.
        ref_bf16 = reference_forward_bf16(xB, w1, w2, w3)
        assert jnp.allclose(out, ref_bf16, atol=2e-3, rtol=2e-3), \
            f"mismatch vs bf16 reference (B={B})"
        # Loose sanity check vs. the pure-f32 PyTorch-equivalent forward
        # (bf16 operands introduce ~1e-2-level quantization per layer).
        ref_f32 = reference_forward_f32(xB, w1, w2, w3)
        assert jnp.allclose(out, ref_f32, atol=1e-1, rtol=1e-1), \
            f"mismatch vs f32 reference (B={B})"

    check(24)    # small, NOT a multiple of 16 -> ragged padding, 1-step grid
    check(600)   # exercises balanced multi-step (2 x 304-row tiles) path

    print("KERNEL_OK")
</pallas_src>

<mosaic_0001>
module attributes {stable_mosaic.version = 11 : i64} {
  func.func @_mlp_kernel(%arg0: i32, %arg1: memref<32x64xf32, #tpu.memory_space<vmem>>, %arg2: memref<64x256xbf16, #tpu.memory_space<vmem>>, %arg3: memref<256x256xbf16, #tpu.memory_space<vmem>>, %arg4: memref<256x128xbf16, #tpu.memory_space<vmem>>, %arg5: memref<32x128xf32, #tpu.memory_space<vmem>>) attributes {dimension_semantics = [#tpu.dimension_semantics<parallel>], iteration_bounds = array<i64: 1>, scalar_prefetch = 0 : i64, scratch_operands = 0 : i64, tpu.core_type = #tpu.core_type<tc>, window_params = [{transform_indices = @transform_0, window_bounds = array<i64: 32, 64>}, {pipeline_mode = #tpu.pipeline_mode<synchronous>, transform_indices = @transform_1, window_bounds = array<i64: 64, 256>}, {pipeline_mode = #tpu.pipeline_mode<synchronous>, transform_indices = @transform_2, window_bounds = array<i64: 256, 256>}, {pipeline_mode = #tpu.pipeline_mode<synchronous>, transform_indices = @transform_3, window_bounds = array<i64: 256, 128>}, {transform_indices = @transform_4, window_bounds = array<i64: 32, 128>}]} {
    %c0 = arith.constant 0 : index
    %c0_0 = arith.constant 0 : index
    %0 = vector.load %arg1[%c0, %c0_0] : memref<32x64xf32, #tpu.memory_space<vmem>>, vector<32x64xf32>
    %1 = arith.truncf %0 : vector<32x64xf32> to vector<32x64xbf16>
    %c0_1 = arith.constant 0 : index
    %c0_2 = arith.constant 0 : index
    %2 = vector.load %arg2[%c0_1, %c0_2] : memref<64x256xbf16, #tpu.memory_space<vmem>>, vector<64x256xbf16>
    %cst = arith.constant dense<0.000000e+00> : vector<32x256xf32>
    %3 = tpu.matmul %1, %2, %cst {dimension_numbers = #tpu.dot_dimension_numbers<[1], [0], [0], [1], [0, 0, 1, 1], [], []>} : vector<32x64xbf16>, vector<64x256xbf16>, vector<32x256xf32> -> vector<32x256xf32>
    %cst_3 = arith.constant -1.000000e+00 : f32
    %cst_4 = arith.constant 1.000000e+00 : f32
    %4 = vector.broadcast %cst_3 : f32 to vector<32x256xf32>
    %5 = arith.maximumf %4, %3 : vector<32x256xf32>
    %6 = vector.broadcast %cst_4 : f32 to vector<32x256xf32>
    %7 = arith.minimumf %6, %5 : vector<32x256xf32>
    %8 = arith.truncf %7 : vector<32x256xf32> to vector<32x256xbf16>
    %c0_5 = arith.constant 0 : index
    %c0_6 = arith.constant 0 : index
    %9 = vector.load %arg3[%c0_5, %c0_6] : memref<256x256xbf16, #tpu.memory_space<vmem>>, vector<256x256xbf16>
    %cst_7 = arith.constant dense<0.000000e+00> : vector<32x256xf32>
    %10 = tpu.matmul %8, %9, %cst_7 {dimension_numbers = #tpu.dot_dimension_numbers<[1], [0], [0], [1], [0, 0, 1, 1], [], []>} : vector<32x256xbf16>, vector<256x256xbf16>, vector<32x256xf32> -> vector<32x256xf32>
    %cst_8 = arith.constant -1.000000e+00 : f32
    %cst_9 = arith.constant 1.000000e+00 : f32
    %11 = vector.broadcast %cst_8 : f32 to vector<32x256xf32>
    %12 = arith.maximumf %11, %10 : vector<32x256xf32>
    %13 = vector.broadcast %cst_9 : f32 to vector<32x256xf32>
    %14 = arith.minimumf %13, %12 : vector<32x256xf32>
    %15 = arith.truncf %14 : vector<32x256xf32> to vector<32x256xbf16>
    %c0_10 = arith.constant 0 : index
    %c0_11 = arith.constant 0 : index
    %16 = vector.load %arg4[%c0_10, %c0_11] : memref<256x128xbf16, #tpu.memory_space<vmem>>, vector<256x128xbf16>
    %cst_12 = arith.constant dense<0.000000e+00> : vector<32x128xf32>
    %17 = tpu.matmul %15, %16, %cst_12 {dimension_numbers = #tpu.dot_dimension_numbers<[1], [0], [0], [1], [0, 0, 1, 1], [], []>} : vector<32x256xbf16>, vector<256x128xbf16>, vector<32x128xf32> -> vector<32x128xf32>
    %cst_13 = arith.constant -1.000000e+00 : f32
    %cst_14 = arith.constant 1.000000e+00 : f32
    %18 = vector.broadcast %cst_13 : f32 to vector<32x128xf32>
    %19 = arith.maximumf %18, %17 : vector<32x128xf32>
    %20 = vector.broadcast %cst_14 : f32 to vector<32x128xf32>
    %21 = arith.minimumf %20, %19 : vector<32x128xf32>
    %c0_15 = arith.constant 0 : index
    %c0_16 = arith.constant 0 : index
    %22 = vector.load %arg5[%c0_15, %c0_16] : memref<32x128xf32, #tpu.memory_space<vmem>>, vector<32x128xf32>
    tpu.vector_store %arg5[%c0_15, %c0_16], %21 {strides = array<i32>} : memref<32x128xf32, #tpu.memory_space<vmem>>, vector<32x128xf32>,
    return
  }
  func.func @transform_0(%arg0: i32) -> (i32, i32) {
    %c0_i32 = arith.constant 0 : i32
    %c0_i32_0 = arith.constant 0 : i32
    return %arg0, %c0_i32 : i32, i32
  }
  func.func @transform_1(%arg0: i32) -> (i32, i32) {
    %c0_i32 = arith.constant 0 : i32
    %c0_i32_0 = arith.constant 0 : i32
    %c0_i32_1 = arith.constant 0 : i32
    return %c0_i32, %c0_i32_0 : i32, i32
  }
  func.func @transform_2(%arg0: i32) -> (i32, i32) {
    %c0_i32 = arith.constant 0 : i32
    %c0_i32_0 = arith.constant 0 : i32
    %c0_i32_1 = arith.constant 0 : i32
    return %c0_i32, %c0_i32_0 : i32, i32
  }
  func.func @transform_3(%arg0: i32) -> (i32, i32) {
    %c0_i32 = arith.constant 0 : i32
    %c0_i32_0 = arith.constant 0 : i32
    %c0_i32_1 = arith.constant 0 : i32
    return %c0_i32, %c0_i32_0 : i32, i32
  }
  func.func @transform_4(%arg0: i32) -> (i32, i32) {
    %c0_i32 = arith.constant 0 : i32
    %c0_i32_0 = arith.constant 0 : i32
    return %arg0, %c0_i32 : i32, i32
  }
}

</mosaic_0001>

<bundles_post_ra>
// kernel: tpu_custom_call.1
= control target key start
LH: loop header
LB: loop body
LE: loop exit
PB: predicated region body
PF: predicated region fallthrough
CT: control target
= control target key end

     0   :  { %9 = vsyncpa [#allocation3], 0  ;;  %s1114_s0 = inlined_call_operand.hbm [shape: f32[32,64], index: 0, kind: input, shape index: {}]   ;;  %s1115_s1 = inlined_call_operand.hbm [shape: bf16[64,256], index: 1, kind: input, shape index: {}]   ;;  %s1116_s2 = inlined_call_operand.hbm [shape: bf16[256,256], index: 2, kind: input, shape index: {}]   ;;  %s1117_s3 = inlined_call_operand.hbm [shape: bf16[256,128], index: 3, kind: input, shape index: {}]   ;;  %s1118_s4 = inlined_call_operand.hbm [shape: f32[32,128], index: 4, kind: output, shape index: {}]  }
   0x1   :  { %10 = vsyncpa [#allocation6], 0 }
   0x2   :  { %11 = vsyncpa [#allocation9], 0 }
   0x3   :  { %12 = vsyncpa [#allocation4], 0  ;;  %s991_s15 = smov [#allocation5]   ;;  %s992_s17 = smov [#allocation2]  }
   0x4   :  { %s30_s16 = sshll.u32 %s991_s15, 4  ;;  %s18_s18 = sshll.u32 %s992_s17, 4  ;;  %s31_s16 = int_to_ptr.vmem [resolvable:$true] %s30_s16  ;;  %s1026_s18 = int_to_ptr.vmem [resolvable:$true] %s18_s18 }
   0x5   :  { %s873_s21 = scalar_lea.hbm %s1115_s1, 1024 }
   0x6   :  { %p874_p0 = scmp.ne.s32.totalorder %s1115_s1, %s873_s21  ;;  %p877_p1 = scmp.lt.u32.totalorder %s873_s21, %s1115_s1 }
   0x8   :  { %p879_p2 = pnand %p877_p1, %p874_p0 }
   0xa   :  { %882 = shalt.err (!%p879_p2)
}
   0xb   :  { %s883_s26 = scalar_lea.vmem %s31_s16, 1024  ;;  %p888_p4 = scmp.lt.s32.totalorder %s31_s16, %s31_s16 }
   0xc   :  { %p884_p3 = scmp.ne.s32.totalorder %s31_s16, %s883_s26  ;;  %p889_p5 = scmp.lt.s32.totalorder %s883_s26, %s883_s26 }
   0xe   :  { %p890_p6 = por %p889_p5, %p888_p4 }
  0x10   :  { %p891_p7 = pnand %p890_p6, %p884_p3 }
  0x12   :  { %894 = shalt.err (!%p891_p7)
}
  0x13   :  { %s993_s27 = smov 128   ;;  %s994_s28 = smov 8  }
  0x14   :  { %36 = dma.hbm_to_vmem [thread:$0]  %s1115_s1, 1024, %s31_s16, [#allocation6], %s993_s27, %s993_s27, %s994_s28  }
  0x15   :  { %s895_s7 = scalar_lea.hbm %s1114_s0, 512 }
  0x16   :  { %p896_p8 = scmp.ne.s32.totalorder %s1114_s0, %s895_s7  ;;  %p899_p9 = scmp.lt.u32.totalorder %s895_s7, %s1114_s0 }
  0x18   :  { %p901_p10 = pnand %p899_p9, %p896_p8 }
  0x1a   :  { %904 = shalt.err (!%p901_p10)
}
  0x1b   :  { %s905_s12 = scalar_lea.vmem %s1026_s18, 512  ;;  %p910_p12 = scmp.lt.s32.totalorder %s1026_s18, %s1026_s18 }
  0x1c   :  { %p906_p11 = scmp.ne.s32.totalorder %s1026_s18, %s905_s12  ;;  %p911_p13 = scmp.lt.s32.totalorder %s905_s12, %s905_s12 }
  0x1e   :  { %p912_p0 = por %p911_p13, %p910_p12 }
  0x20   :  { %p913_p1 = pnand %p912_p0, %p906_p11 }
  0x22   :  { %916 = shalt.err (!%p913_p1)
}
  0x23   :  { %24 = dma.hbm_to_vmem [thread:$0]  %s1114_s0, 512, %s1026_s18, [#allocation3], %s993_s27, %s993_s27, %s994_s28  }
  0x24   :  { %s995_s14 = smov [#allocation7]   ;;  %s996_s16 = smov [#allocation8]  }
  0x25   :  { %s42_s15 = sshll.u32 %s995_s14, 4  ;;  %s54_s17 = sshll.u32 %s996_s16, 4  ;;  %s43_s15 = int_to_ptr.vmem [resolvable:$true] %s42_s15  ;;  %s1063_s17 = int_to_ptr.vmem [resolvable:$true] %s54_s17 }
  0x26   :  { %s917_s21 = scalar_lea.hbm %s1116_s2, 4096 }
  0x27   :  { %p918_p2 = scmp.ne.s32.totalorder %s1116_s2, %s917_s21  ;;  %p921_p3 = scmp.lt.u32.totalorder %s917_s21, %s1116_s2 }
  0x29   :  { %p923_p4 = pnand %p921_p3, %p918_p2 }
  0x2b   :  { %926 = shalt.err (!%p923_p4)
}
  0x2c   :  { %s927_s0 = scalar_lea.vmem %s43_s15, 4096  ;;  %p932_p6 = scmp.lt.s32.totalorder %s43_s15, %s43_s15 }
  0x2d   :  { %p928_p5 = scmp.ne.s32.totalorder %s43_s15, %s927_s0  ;;  %p933_p7 = scmp.lt.s32.totalorder %s927_s0, %s927_s0 }
  0x2f   :  { %p934_p8 = por %p933_p7, %p932_p6 }
  0x31   :  { %p935_p9 = pnand %p934_p8, %p928_p5 }
  0x33   :  { %938 = shalt.err (!%p935_p9)
}
  0x34   :  { %48 = dma.hbm_to_vmem [thread:$0]  %s1116_s2, 4096, %s43_s15, [#allocation6], %s993_s27, %s993_s27, %s994_s28  }
  0x35   :  { %s939_s5 = scalar_lea.hbm %s1117_s3, 2048 }
  0x36   :  { %p940_p10 = scmp.ne.s32.totalorder %s1117_s3, %s939_s5  ;;  %p943_p11 = scmp.lt.u32.totalorder %s939_s5, %s1117_s3 }
  0x38   :  { %p945_p12 = pnand %p943_p11, %p940_p10 }
  0x3a   :  { %948 = shalt.err (!%p945_p12)
}
  0x3b   :  { %s949_s10 = scalar_lea.vmem %s1063_s17, 2048  ;;  %p954_p0 = scmp.lt.s32.totalorder %s1063_s17, %s1063_s17 }
  0x3c   :  { %p950_p13 = scmp.ne.s32.totalorder %s1063_s17, %s949_s10  ;;  %p955_p1 = scmp.lt.s32.totalorder %s949_s10, %s949_s10 }
  0x3e   :  { %p956_p2 = por %p955_p1, %p954_p0 }
  0x40   :  { %p957_p3 = pnand %p956_p2, %p950_p13 }
  0x42   :  { %960 = shalt.err (!%p957_p3)
}
  0x43   :  { %s997_s2 = smov 64   ;;  %s998_s11 = smov 4  }
  0x44   :  { %60 = dma.hbm_to_vmem [thread:$0]  %s1117_s3, 2048, %s1063_s17, [#allocation9], %s997_s2, %s997_s2, %s998_s11  }
  0x45   :  { %983 = dma.done.wait [#allocation3], 512  }
  0x46   :  { %984 = vsyncadd [#allocation3], 4294966784 }
  0x47   :  { %985 = dma.done.wait [#allocation6], 5120  }
  0x48   :  { %986 = vsyncadd [#allocation6], 4294962176 }
  0x49   :  { %987 = dma.done.wait [#allocation9], 2048  }
  0x4a   :  { %988 = vsyncadd [#allocation9], 4294965248  ;;  %v999_v0 = vmov 0   ;;  %v797_v1 = vld [vmem:[#allocation5 + $0x4] ss:$8 sps:$4 sm:$0xff]   ;;  %vm128_vm0 = vcmask 523264  }
  0x4b   :  { %167 = vmatprep.mubr.bf16.mxu0 %v999_v0  ;;  %v799_v2 = vld [vmem:[#allocation5] ss:$8 sps:$4 sm:$0xff]   ;;  %135 = vmatprep.subr.bf16.mxu0 %v797_v1  ;;  %v800_v3 = vld [vmem:[#allocation5 + $0x14] ss:$8 sps:$4 sm:$0xff]   ;;  %v802_v4 = vld [vmem:[#allocation5 + $0x10] ss:$8 sps:$4 sm:$0xff]  }
  0x4c   :  { %136 = vmatpush1.bf16.msra.mxu0 %v799_v2  ;;  %v803_v5 = vld [vmem:[#allocation5 + $0x24] ss:$8 sps:$4 sm:$0xff]   ;;  %v805_v6 = vld [vmem:[#allocation5 + $0x20] ss:$8 sps:$4 sm:$0xff]   ;;  %v806_v7 = vld [vmem:[#allocation5 + $0x34] ss:$8 sps:$4 sm:$0xff]  }
  0x4d   :  { %137 = vmatprep.subr.bf16.mxu0 %v800_v3  ;;  %v809_v8 = vld [vmem:[#allocation7 + $0x4] ss:$8 sps:$4 sm:$0xff]   ;;  %v811_v9 = vld [vmem:[#allocation7] ss:$8 sps:$4 sm:$0xff]   ;;  %v812_v10 = vld [vmem:[#allocation7 + $0x14] ss:$8 sps:$4 sm:$0xff]  }
  0x4e   :  { %v808_v11 = vld [vmem:[#allocation5 + $0x30] ss:$8 sps:$4 sm:$0xff]   ;;  %400 = vmatprep.subr.bf16.mxu1 %v809_v8  ;;  %v74_v12 = vld [vmem:[#allocation2] sm:$0xff]  ;;  %v75_v14 = vld [vmem:[#allocation2 + $0x8] sm:$0xff]  ;;  %s1000_s3 = smov [#allocation10]  }
  0x4f   :  { %401 = vmatpush1.bf16.msra.mxu1 %v811_v9  ;;  %v814_v13 = vld [vmem:[#allocation7 + $0x10] ss:$8 sps:$4 sm:$0xff]   ;;  %v815_v15 = vld [vmem:[#allocation7 + $0x24] ss:$8 sps:$4 sm:$0xff]   ;;  %v78_v16 = vpack.c.bf16 %v75_v14, %v74_v12  ;;  %v817_v17 = vld [vmem:[#allocation7 + $0x20] ss:$8 sps:$4 sm:$0xff]  }
  0x50   :  { %138 = vmatpush1.bf16.msra.mxu0 %v802_v4  ;;  %402 = vmatprep.subr.bf16.mxu1 %v812_v10  ;;  %v818_v18 = vld [vmem:[#allocation7 + $0x34] ss:$8 sps:$4 sm:$0xff]   ;;  %v820_v20 = vld [vmem:[#allocation7 + $0x30] ss:$8 sps:$4 sm:$0xff]   ;;  %v821_v22 = vld [vmem:[#allocation7 + $0x44] ss:$8 sps:$4 sm:$0xff]  }
  0x51   :  { %139 = vmatprep.subr.bf16.mxu0 %v803_v5  ;;  %v76_v19 = vld [vmem:[#allocation2 + $0x10] sm:$0xff]  ;;  %v77_v21 = vld [vmem:[#allocation2 + $0x18] sm:$0xff]  ;;  %v823_v24 = vld [vmem:[#allocation7 + $0x40] ss:$8 sps:$4 sm:$0xff]   ;;  %s667_s13 = sshll.u32 %s1000_s3, 4  ;;  %s668_s13 = int_to_ptr.vmem [resolvable:$true] %s667_s13 }
  0x52   :  { %v79_v23 = vpack.c.bf16 %v77_v21, %v76_v19  ;;  %v824_v25 = vld [vmem:[#allocation7 + $0x54] ss:$8 sps:$4 sm:$0xff]   ;;  %v826_v26 = vld [vmem:[#allocation7 + $0x50] ss:$8 sps:$4 sm:$0xff]   ;;  %v827_v27 = vld [vmem:[#allocation7 + $0x64] ss:$8 sps:$4 sm:$0xff]   ;;  %p966_p5 = scmp.lt.s32.totalorder %s668_s13, %s668_s13 }
  0x53   :  { %403 = vmatpush1.bf16.msra.mxu1 %v814_v13  ;;  %v829_v28 = vld [vmem:[#allocation7 + $0x60] ss:$8 sps:$4 sm:$0xff]   ;;  %v830_v29 = vld [vmem:[#allocation7 + $0x74] ss:$8 sps:$4 sm:$0xff]   ;;  %v832_v30 = vld [vmem:[#allocation7 + $0x70] ss:$8 sps:$4 sm:$0xff]  }
  0x54   :  { %140 = vmatpush1.bf16.msra.mxu0 %v805_v6  ;;  %404 = vmatprep.subr.bf16.mxu1 %v815_v15  ;;  %v833_v31 = vld [vmem:[#allocation7 + $0x84] ss:$8 sps:$4 sm:$0xff]   ;;  %v835_v32 = vld [vmem:[#allocation7 + $0x80] ss:$8 sps:$4 sm:$0xff]   ;;  %v836_v33 = vld [vmem:[#allocation7 + $0x94] ss:$8 sps:$4 sm:$0xff]  }
  0x55   :  { %141 = vmatprep.subr.bf16.mxu0 %v806_v7  ;;  %v838_v34 = vld [vmem:[#allocation7 + $0x90] ss:$8 sps:$4 sm:$0xff]   ;;  %v839_v35 = vld [vmem:[#allocation7 + $0xa4] ss:$8 sps:$4 sm:$0xff]   ;;  %v841_v36 = vld [vmem:[#allocation7 + $0xa0] ss:$8 sps:$4 sm:$0xff]  }
  0x56   :  { %v842_v37 = vld [vmem:[#allocation7 + $0xb4] ss:$8 sps:$4 sm:$0xff]   ;;  %v844_v38 = vld [vmem:[#allocation7 + $0xb0] ss:$8 sps:$4 sm:$0xff]   ;;  %v845_v39 = vld [vmem:[#allocation7 + $0xc4] ss:$8 sps:$4 sm:$0xff]  }
  0x57   :  { %405 = vmatpush1.bf16.msra.mxu1 %v817_v17  ;;  %v847_v40 = vld [vmem:[#allocation7 + $0xc0] ss:$8 sps:$4 sm:$0xff]   ;;  %v848_v41 = vld [vmem:[#allocation7 + $0xd4] ss:$8 sps:$4 sm:$0xff]   ;;  %v850_v42 = vld [vmem:[#allocation7 + $0xd0] ss:$8 sps:$4 sm:$0xff]  }
  0x58   :  { %142 = vmatpush1.bf16.msra.mxu0 %v808_v11  ;;  %406 = vmatprep.subr.bf16.mxu1 %v818_v18  ;;  %v851_v43 = vld [vmem:[#allocation7 + $0xe4] ss:$8 sps:$4 sm:$0xff]   ;;  %v853_v44 = vld [vmem:[#allocation7 + $0xe0] ss:$8 sps:$4 sm:$0xff]   ;;  %v854_v45 = vld [vmem:[#allocation7 + $0xf4] ss:$8 sps:$4 sm:$0xff]  }
  0x59   :  { %v856_v46 = vld [vmem:[#allocation7 + $0xf0] ss:$8 sps:$4 sm:$0xff]   ;;  %v857_v47 = vld [vmem:[#allocation8 + $0x40] sm:$0xff]   ;;  %v859_v49 = vld [vmem:[#allocation8 + $0x48] sm:$0xff]   ;;  %s961_s14 = scalar_lea.vmem %s668_s13, 512 }
  0x5a   :  { %v858_v48 = vld [vmem:[#allocation8] sm:$0xff]   ;;  %759 = vmatprep.subr.bf16.mxu0 %v857_v47  ;;  %v860_v50 = vld [vmem:[#allocation8 + $0x8] sm:$0xff]   ;;  %v861_v51 = vld [vmem:[#allocation8 + $0x50] sm:$0xff]   ;;  %p962_p4 = scmp.ne.s32.totalorder %s668_s13, %s961_s14  ;;  %p967_p6 = scmp.lt.s32.totalorder %s961_s14, %s961_s14 }
  0x5b   :  { %689 = vmatmul.mubr.msk.bf16.vlgmr.msra.gmra.mrb[0].mxu0 %vm128_vm0, %v78_v16  ;;  %407 = vmatpush1.bf16.msra.mxu1 %v820_v20  ;;  %v862_v52 = vld [vmem:[#allocation8 + $0x10] sm:$0xff]   ;;  %v863_v53 = vld [vmem:[#allocation8 + $0x58] sm:$0xff]   ;;  %v865_v55 = vld [vmem:[#allocation8 + $0x60] sm:$0xff]  }
  0x5c   :  { %177 = vmatprep.mubr.bf16.mxu0 %v999_v0  ;;  %408 = vmatprep.subr.bf16.mxu1 %v821_v22  ;;  %v864_v54 = vld [vmem:[#allocation8 + $0x18] sm:$0xff]   ;;  %v866_v56 = vld [vmem:[#allocation8 + $0x20] sm:$0xff]   ;;  %v867_v57 = vld [vmem:[#allocation8 + $0x68] sm:$0xff]   ;;  %p968_p7 = por %p967_p6, %p966_p5 }
  0x5d   :  { %760 = vmatpush3.bf16.msra.mxu0 %v858_v48  ;;  %v868_v58 = vld [vmem:[#allocation8 + $0x28] sm:$0xff]   ;;  %v869_v15 = vld [vmem:[#allocation8 + $0x70] sm:$0xff]   ;;  %v871_v17 = vld [vmem:[#allocation8 + $0x78] sm:$0xff]  }
  0x5e   :  { %761 = vmatprep.subr.bf16.mxu0 %v859_v49  ;;  %v870_v16 = vld [vmem:[#allocation8 + $0x30] sm:$0xff]   ;;  %v872_v18 = vld [vmem:[#allocation8 + $0x38] sm:$0xff]   ;;  %p969_p8 = pnand %p968_p7, %p962_p4 }
  0x5f   :  { %409 = vmatpush1.bf16.msra.mxu1 %v823_v24 }
  0x60   :  { %410 = vmatprep.subr.bf16.mxu1 %v824_v25 }
  0x61   :  { %762 = vmatpush3.bf16.msra.mxu0 %v860_v50 }
  0x62   :  { %763 = vmatprep.subr.bf16.mxu0 %v861_v51 }
  0x63   :  { %690 = vmatmul.mubr.msk.bf16.gmra.mrb[4].mxu0 %vm128_vm0, %v79_v23  ;;  %411 = vmatpush1.bf16.msra.mxu1 %v826_v26 }
  0x64   :  { %412 = vmatprep.subr.bf16.mxu1 %v827_v27 }
  0x65   :  { %764 = vmatpush3.bf16.msra.mxu0 %v862_v52 }
  0x66   :  { %765 = vmatprep.subr.bf16.mxu0 %v863_v53 }
  0x67   :  { %413 = vmatpush1.bf16.msra.mxu1 %v829_v28 }
  0x68   :  { %414 = vmatprep.subr.bf16.mxu1 %v830_v29 }
  0x69   :  { %766 = vmatpush3.bf16.msra.mxu0 %v864_v54 }
  0x6a   :  { %767 = vmatprep.subr.bf16.mxu0 %v865_v55 }
  0x6b   :  { %415 = vmatpush1.bf16.msra.mxu1 %v832_v30 }
  0x6c   :  { %416 = vmatprep.subr.bf16.mxu1 %v833_v31 }
  0x6d   :  { %768 = vmatpush3.bf16.msra.mxu0 %v866_v56 }
  0x6e   :  { %769 = vmatprep.subr.bf16.mxu0 %v867_v57 }
  0x6f   :  { %417 = vmatpush1.bf16.msra.mxu1 %v835_v32 }
  0x70   :  { %418 = vmatprep.subr.bf16.mxu1 %v836_v33 }
  0x71   :  { %770 = vmatpush3.bf16.msra.mxu0 %v868_v58 }
  0x72   :  { %771 = vmatprep.subr.bf16.mxu0 %v869_v15 }
  0x73   :  { %419 = vmatpush1.bf16.msra.mxu1 %v838_v34 }
  0x74   :  { %420 = vmatprep.subr.bf16.mxu1 %v839_v35 }
  0x75   :  { %772 = vmatpush3.bf16.msra.mxu0 %v870_v16 }
  0x76   :  { %773 = vmatprep.subr.bf16.mxu0 %v871_v17 }
  0x77   :  { %421 = vmatpush1.bf16.msra.mxu1 %v841_v36 }
  0x78   :  { %422 = vmatprep.subr.bf16.mxu1 %v842_v37 }
  0x79   :  { %774 = vmatpush3.bf16.msra.mxu0 %v872_v18 }
  0x7b   :  { %423 = vmatpush1.bf16.msra.mxu1 %v844_v38 }
  0x7c   :  { %424 = vmatprep.subr.bf16.mxu1 %v845_v39 }
  0x7f   :  { %425 = vmatpush1.bf16.msra.mxu1 %v847_v40 }
  0x80   :  { %426 = vmatprep.subr.bf16.mxu1 %v848_v41 }
  0x83   :  { %427 = vmatpush1.bf16.msra.mxu1 %v850_v42 }
  0x84   :  { %428 = vmatprep.subr.bf16.mxu1 %v851_v43 }
  0x87   :  { %429 = vmatpush1.bf16.msra.mxu1 %v853_v44 }
  0x88   :  { %430 = vmatprep.subr.bf16.mxu1 %v854_v45 }
  0x8b   :  { %431 = vmatpush1.bf16.msra.mxu1 %v856_v46 }
 0x12e   :  { %v169_v59 = vpop.f32.mrb[0].mxu0 }
 0x12f   :  { %v171_v60 = vpop.f32.mrb[1].mxu0  ;;  %v691_v62 = vclamps-f32 %v169_v59, 1.0 }
 0x130   :  { %v173_v61 = vpop.f32.mrb[2].mxu0  ;;  %v692_v1 = vclamps-f32 %v171_v60, 1.0 }
 0x131   :  { %v693_v63 = vclamps-f32 %v173_v61, 1.0  ;;  %v175_v0 = vpop.f32.mrb[3].mxu0 }
 0x132   :  { %v694_v2 = vclamps-f32 %v175_v0, 1.0 }
 0x133   :  { %v204_v3 = vpack.c.bf16 %v693_v63, %v691_v62 }
 0x134   :  { %v205_v4 = vpack.c.bf16 %v694_v2, %v692_v1 }
 0x136   :  { %v179_v5 = vpop.f32.mrb[4].mxu0  ;;  %432 = vmatprep.mubr.bf16.mxu1 %v205_v4 }
 0x137   :  { %v181_v6 = vpop.f32.mrb[5].mxu0  ;;  %433 = vmatmul.mubr.bf16.vlgmr.msra.gmra.mrb[0].mxu1 %v204_v3  ;;  %v695_v8 = vclamps-f32 %v179_v5, 1.0 }
 0x138   :  { %v183_v7 = vpop.f32.mrb[6].mxu0  ;;  %v696_v11 = vclamps-f32 %v181_v6, 1.0 }
 0x139   :  { %v697_v9 = vclamps-f32 %v183_v7, 1.0  ;;  %v185_v10 = vpop.f32.mrb[7].mxu0 }
 0x13a   :  { %v698_v12 = vclamps-f32 %v185_v10, 1.0 }
 0x13b   :  { %v206_v13 = vpack.c.bf16 %v697_v9, %v695_v8 }
 0x13c   :  { %v207_v14 = vpack.c.bf16 %v698_v12, %v696_v11 }
 0x13e   :  { %442 = vmatprep.mubr.bf16.mxu1 %v207_v14 }
 0x13f   :  { %443 = vmatmul.mubr.bf16.gmra.mrb[4].mxu1 %v206_v13 }
 0x20a   :  { %v434_v19 = vpop.f32.mrb[0].mxu1 }
 0x20b   :  { %v436_v20 = vpop.f32.mrb[1].mxu1  ;;  %v731_v22 = vclamps-f32 %v434_v19, 1.0 }
 0x20c   :  { %v438_v21 = vpop.f32.mrb[2].mxu1  ;;  %v732_v25 = vclamps-f32 %v436_v20, 1.0 }
 0x20d   :  { %v733_v23 = vclamps-f32 %v438_v21, 1.0  ;;  %v440_v24 = vpop.f32.mrb[3].mxu1 }
 0x20e   :  { %v734_v26 = vclamps-f32 %v440_v24, 1.0 }
 0x20f   :  { %v469_v27 = vpack.c.bf16 %v733_v23, %v731_v22 }
 0x210   :  { %v470_v28 = vpack.c.bf16 %v734_v26, %v732_v25 }
 0x212   :  { %v444_v29 = vpop.f32.mrb[4].mxu1  ;;  %633 = vmatprep.mubr.bf16.mxu0 %v470_v28 }
 0x213   :  { %v446_v30 = vpop.f32.mrb[5].mxu1  ;;  %634 = vmatmul.mubr.bf16.vlgmr.msra.gmra.mrb[8].mxu0 %v469_v27  ;;  %v735_v32 = vclamps-f32 %v444_v29, 1.0 }
 0x214   :  { %v448_v31 = vpop.f32.mrb[6].mxu1  ;;  %v736_v35 = vclamps-f32 %v446_v30, 1.0 }
 0x215   :  { %v737_v33 = vclamps-f32 %v448_v31, 1.0  ;;  %v450_v34 = vpop.f32.mrb[7].mxu1 }
 0x216   :  { %v738_v36 = vclamps-f32 %v450_v34, 1.0 }
 0x217   :  { %v471_v37 = vpack.c.bf16 %v737_v33, %v735_v32 }
 0x218   :  { %v472_v38 = vpack.c.bf16 %v738_v36, %v736_v35 }
 0x21a   :  { %641 = vmatprep.mubr.bf16.mxu0 %v472_v38 }
 0x21b   :  { %642 = vmatmul.mubr.bf16.gmra.mrb[12].mxu0 %v471_v37 }
 0x2e6   :  { %v775_v39 = vpop.f32.mrb[8].mxu0 }
 0x2e7   :  { %v776_v40 = vpop.f32.mrb[9].mxu0 }
 0x2e8   :  { %v777_v41 = vadd.f32 %v776_v40, %v775_v39  ;;  %v778_v42 = vpop.f32.mrb[10].mxu0 }
 0x2e9   :  { %v779_v43 = vpop.f32.mrb[11].mxu0 }
 0x2ea   :  { %v755_v44 = vclamps-f32 %v777_v41, 1.0  ;;  %v780_v45 = vadd.f32 %v779_v43, %v778_v42 }
 0x2ec   :  { %658 = vst [vmem:[#allocation10] sm:$0xff] %v755_v44  ;;  %v756_v46 = vclamps-f32 %v780_v45, 1.0 }
 0x2ee   :  { %659 = vst [vmem:[#allocation10 + $0x8] sm:$0xff] %v756_v46  ;;  %v781_v47 = vpop.f32.mrb[12].mxu0 }
 0x2ef   :  { %v782_v48 = vpop.f32.mrb[13].mxu0 }
 0x2f0   :  { %v783_v49 = vadd.f32 %v782_v48, %v781_v47  ;;  %v784_v50 = vpop.f32.mrb[14].mxu0 }
 0x2f1   :  { %v785_v51 = vpop.f32.mrb[15].mxu0 }
 0x2f2   :  { %v757_v52 = vclamps-f32 %v783_v49, 1.0  ;;  %v786_v53 = vadd.f32 %v785_v51, %v784_v50 }
 0x2f4   :  { %660 = vst [vmem:[#allocation10 + $0x10] sm:$0xff] %v757_v52  ;;  %v758_v54 = vclamps-f32 %v786_v53, 1.0 }
 0x2f6   :  { %661 = vst [vmem:[#allocation10 + $0x18] sm:$0xff] %v758_v54 }
 0x2f7   :  { %972 = shalt.err (!%p969_p8)
}
 0x2f8   :  { %s973_s17 = scalar_lea.hbm %s1118_s4, 512 }
 0x2f9   :  { %p974_p9 = scmp.ne.s32.totalorder %s1118_s4, %s973_s17  ;;  %p977_p10 = scmp.lt.u32.totalorder %s973_s17, %s1118_s4 }
 0x2fb   :  { %p979_p11 = pnand %p977_p10, %p974_p9 }
 0x2fd   :  { %982 = shalt.err (!%p979_p11)
}
 0x2fe   :  { %673 = dma.vmem_to_hbm [thread:$0]  %s668_s13, 512, %s1118_s4, [#allocation4], %s993_s27, %s993_s27, %s994_s28  }
 0x2ff   :  { %989 = dma.done.wait [#allocation4], 512  }
 0x300   :  { %990 = vsyncadd [#allocation4], 4294966784 }
 0x301   :  { %677 = vsyncpa [#allocation3], 1 }
 0x302   :  { %678 = vsyncpa [#allocation6], 1 }
 0x303   :  { %679 = vsyncpa [#allocation9], 1 }
 0x304   :  { %680 = vsyncpa [#allocation4], 1 }

</bundles_post_ra>
